<compile_context>
chip_gen: v7x
topology: tpu7x:2x2x1
jax: 0.10.0
libtpu: 0.0.40
codegen_flags: <defaults>
</compile_context>

<pallas_src>
import functools

import numpy as np
import jax
import jax.numpy as jnp
from jax import lax
from jax.experimental import pallas as pl
from jax.experimental.pallas import tpu as pltpu

BN_EPS = 1e-5  # nn.BatchNorm2d default eps


def _round_up(x, m):
    return ((x + m - 1) // m) * m


# --------------------------------------------------------------------------- #
# Pallas kernel: fused matmul + bias (+ ReLU); bf16 in, f32 accumulate         #
# --------------------------------------------------------------------------- #
def _mm_bias_kernel(x_ref, w_ref, b_ref, o_ref, *, relu):
    # x_ref: (TM, K) bf16, w_ref: (K, Np) bf16, b_ref: (1, Np) f32, o_ref: (TM, Np)
    acc = jnp.dot(x_ref[...], w_ref[...], preferred_element_type=jnp.float32)
    acc = acc + b_ref[...]
    if relu:
        acc = jnp.maximum(acc, 0.0)
    o_ref[...] = acc.astype(o_ref.dtype)


def _row_tile(M, tile_m):
    """Pick row tile TM: an exact divisor of M, multiple of 8, preferring >=2
    row blocks (keeps both v7x TCs busy and avoids pad+slice round trips).
    Falls back to padding for ragged M."""
    cap = min(tile_m, M)
    if M >= 16:
        cap = min(cap, (M + 1) // 2)          # aim for at least 2 row blocks
    start = cap - (cap % 8)
    for tm in range(start, 7, -8):            # trace-time loop, <= tile_m/8 iters
        if M % tm == 0:
            return tm, M
    if M <= 8 or M % cap == 0:
        return min(cap, M), M
    tm = start if start >= 8 else cap         # ragged fallback: pad M up
    return tm, _round_up(M, tm)


def _fused_matmul_stack(x_lmk, w_lkn, b_l1n, *, relu, out_dtype=jnp.bfloat16,
                        tile_m=512):
    """out[l] = act(x[l] @ w[l] + b[l]) for a stack of L same-shaped layers.

    grid = (L, M-tiles); per-layer weights selected by the leading (squeezed)
    block dim.  All arithmetic happens inside the kernel."""
    L, M, K = x_lmk.shape
    Np = w_lkn.shape[2]
    TM, Mp = _row_tile(M, tile_m)
    if Mp != M:                               # not hit for the pow-2 shapes here
        x_lmk = jnp.pad(x_lmk, ((0, 0), (0, Mp - M), (0, 0)))

    out = pl.pallas_call(
        functools.partial(_mm_bias_kernel, relu=relu),
        out_shape=jax.ShapeDtypeStruct((L, Mp, Np), out_dtype),
        grid=(L, Mp // TM),
        in_specs=[
            pl.BlockSpec((None, TM, K), lambda l, i: (l, i, 0)),
            pl.BlockSpec((None, K, Np), lambda l, i: (l, 0, 0)),
            pl.BlockSpec((None, 1, Np), lambda l, i: (l, 0, 0)),
        ],
        out_specs=pl.BlockSpec((None, TM, Np), lambda l, i: (l, i, 0)),
        compiler_params=pltpu.CompilerParams(
            dimension_semantics=("parallel", "parallel"),
            vmem_limit_bytes=48 * 1024 * 1024),
    )(x_lmk, w_lkn, b_l1n)
    return out[:, :M] if Mp != M else out


# --------------------------------------------------------------------------- #
# Layer wrappers (glue = layout only, math = Pallas kernel)                    #
# --------------------------------------------------------------------------- #
def conv_transpose_2x2_stack(xs_nhwc, params):
    """Stack of PyTorch ConvTranspose2d(kernel=2, stride=2, padding=0) layers
    with identical shapes.  xs_nhwc[l]: (B, Hl, Wl, Cin); params[l]['w'] is in
    torch layout (Cin, Cout, 2, 2)."""
    L = len(xs_nhwc)
    x = jnp.stack(xs_nhwc, 0)
    _, B, Hl, Wl, Cin = x.shape
    Cout = params[0]['w'].shape[1]
    N = 4 * Cout
    Np = _round_up(N, 128)                    # lane-dense output columns

    ws, bs = [], []
    for p in params:
        wm = jnp.transpose(p['w'], (0, 2, 3, 1)).reshape(Cin, N)   # cols = (kh,kw,co)
        bm = jnp.tile(p['b'], 4)
        ws.append(jnp.pad(wm, ((0, 0), (0, Np - N))))
        bs.append(jnp.pad(bm, (0, Np - N)))
    w = jnp.stack(ws, 0).astype(jnp.bfloat16)                      # (L, Cin, Np)
    b = jnp.stack(bs, 0)[:, None, :].astype(jnp.float32)           # (L, 1, Np)

    y = _fused_matmul_stack(
        x.reshape(L, B * Hl * Wl, Cin).astype(jnp.bfloat16), w, b, relu=False)
    # glue: interleave each input pixel's 2x2 output block spatially
    y = y[..., :N].reshape(L, B, Hl, Wl, 2, 2, Cout)
    y = y.transpose(0, 1, 2, 4, 3, 5, 6).reshape(L, B, 2 * Hl, 2 * Wl, Cout)
    return [y[l] for l in range(L)]


def conv3x3_bn_relu_stack(xs_nhwc, params):
    """Stack of single_conv_relu_batch layers (Conv2d 3x3 pad=1 + BN(eval) + ReLU)
    with identical shapes.  BN scale is folded into the weight columns; conv bias
    + BN shift become a single bias row (batch-invariant glue transform)."""
    L = len(xs_nhwc)
    x = jnp.stack(xs_nhwc, 0)
    _, B, H, W, Cin = x.shape
    Cout = params[0]['w'].shape[0]
    Np = _round_up(Cout, 128)

    # glue: zero-pad + im2col (pure layout; columns ordered (ky, kx, ci))
    # TODO(synk): at production sizes do the 9-tap accumulation in-kernel instead.
    xp = jnp.pad(x, ((0, 0), (0, 0), (1, 1), (1, 1), (0, 0)))
    cols = [xp[:, :, ky:ky + H, kx:kx + W, :] for ky in range(3) for kx in range(3)]
    xcol = jnp.concatenate(cols, axis=-1).reshape(L, B * H * W, 9 * Cin)

    ws, bs = [], []
    for p in params:
        scale = p['gamma'] * lax.rsqrt(p['var'] + BN_EPS)
        shift = p['beta'] - p['mean'] * scale
        wm = jnp.transpose(p['w'], (2, 3, 1, 0)).reshape(9 * Cin, Cout) * scale[None, :]
        bm = p['b'] * scale + shift
        ws.append(jnp.pad(wm, ((0, 0), (0, Np - Cout))))
        bs.append(jnp.pad(bm, (0, Np - Cout)))
    w = jnp.stack(ws, 0).astype(jnp.bfloat16)                      # (L, 9Cin, Np)
    b = jnp.stack(bs, 0)[:, None, :].astype(jnp.float32)           # (L, 1, Np)

    y = _fused_matmul_stack(xcol.astype(jnp.bfloat16), w, b, relu=True)
    y = y[..., :Cout].reshape(L, B, H, W, Cout)
    return [y[l] for l in range(L)]


# --------------------------------------------------------------------------- #
# RC_skip forward                                                              #
# --------------------------------------------------------------------------- #
def rc_skip_forward(d1, d2, d3, d4, p):
    """Inputs/outputs NCHW, mirroring PyTorch RC_skip.forward.  Same-shaped
    layers are stacked into single pallas_calls (6 calls total instead of 12)."""
    to_nhwc = lambda t: jnp.transpose(t, (0, 2, 3, 1)).astype(jnp.bfloat16)
    to_nchw = lambda t: jnp.transpose(t, (0, 3, 1, 2)).astype(jnp.float32)
    cat = lambda a, b: jnp.concatenate([a, b], axis=-1)
    d1h, d2h, d3h, d4h = (to_nhwc(t) for t in (d1, d2, d3, d4))

    # stage 1+2: d4 -> tconv -> concat -> up_d3
    (d4u,) = conv_transpose_2x2_stack([d4h], [p['convtrans_d3']])
    (d3_1,) = conv3x3_bn_relu_stack([cat(d3h, d4u)], [p['up_d3']])

    # stage 3+4: the two d2-level layer pairs share shapes -> one call each
    d3u, d2_2u = conv_transpose_2x2_stack(
        [d3h, d3_1], [p['convtrans_d2_1'], p['convtrans_d2_2']])
    d2_1, d2_2 = conv3x3_bn_relu_stack(
        [cat(d2h, d3u), cat(d2h, d2_2u)], [p['up_d2_1'], p['up_d2_2']])

    # stage 5+6: the three d1-level layers share shapes -> one call each
    d1_1u, d1_2u, d1_3u = conv_transpose_2x2_stack(
        [d2h, d2_1, d2_2],
        [p['convtrans_d1_1'], p['convtrans_d1_2'], p['convtrans_d1_3']])
    d1_1, d1_2, d1_3 = conv3x3_bn_relu_stack(
        [cat(d1h, d1_1u), cat(d1h, d1_2u), cat(d1h, d1_3u)],
        [p['up_d1_1'], p['up_d1_2'], p['up_d1_3']])

    return tuple(to_nchw(t) for t in (d3_1, d2_1, d2_2, d1_1, d1_2, d1_3))


# --------------------------------------------------------------------------- #
# Pure-JAX (XLA conv, f32) reference for verification                          #
# --------------------------------------------------------------------------- #
def _ref_tconv(x, w, b):
    wr = jnp.transpose(w, (1, 0, 2, 3))[:, :, ::-1, ::-1]
    y = lax.conv_general_dilated(x, wr, window_strides=(1, 1),
                                 padding=((1, 1), (1, 1)), lhs_dilation=(2, 2),
                                 dimension_numbers=('NCHW', 'OIHW', 'NCHW'))
    return y + b[None, :, None, None]


def _ref_block(x, p):
    y = lax.conv_general_dilated(x, p['w'], (1, 1), ((1, 1), (1, 1)),
                                 dimension_numbers=('NCHW', 'OIHW', 'NCHW'))
    y = y + p['b'][None, :, None, None]
    sc = p['gamma'] * lax.rsqrt(p['var'] + BN_EPS)
    sh = p['beta'] - p['mean'] * sc
    return jnp.maximum(y * sc[None, :, None, None] + sh[None, :, None, None], 0.0)


def reference_forward(d1, d2, d3, d4, p):
    d4u = _ref_tconv(d4, p['convtrans_d3']['w'], p['convtrans_d3']['b'])
    d3_1 = _ref_block(jnp.concatenate([d3, d4u], axis=1), p['up_d3'])
    d3u = _ref_tconv(d3, p['convtrans_d2_1']['w'], p['convtrans_d2_1']['b'])
    d2_1 = _ref_block(jnp.concatenate([d2, d3u], axis=1), p['up_d2_1'])
    d2_2u = _ref_tconv(d3_1, p['convtrans_d2_2']['w'], p['convtrans_d2_2']['b'])
    d2_2 = _ref_block(jnp.concatenate([d2, d2_2u], axis=1), p['up_d2_2'])
    d1_1u = _ref_tconv(d2, p['convtrans_d1_1']['w'], p['convtrans_d1_1']['b'])
    d1_1 = _ref_block(jnp.concatenate([d1, d1_1u], axis=1), p['up_d1_1'])
    d1_2u = _ref_tconv(d2_1, p['convtrans_d1_2']['w'], p['convtrans_d1_2']['b'])
    d1_2 = _ref_block(jnp.concatenate([d1, d1_2u], axis=1), p['up_d1_2'])
    d1_3u = _ref_tconv(d2_2, p['convtrans_d1_3']['w'], p['convtrans_d1_3']['b'])
    d1_3 = _ref_block(jnp.concatenate([d1, d1_3u], axis=1), p['up_d1_3'])
    return (d3_1, d2_1, d2_2, d1_1, d1_2, d1_3)


# --------------------------------------------------------------------------- #
if __name__ == "__main__":
    B = 2
    in_chans, out_chans = 16, 8          # scaled-down RC_skip(in_chans, out_chans)
    H1 = 16                              # d1 spatial; d2=8, d3=4, d4=2

    key = jax.random.PRNGKey(0)
    ks = jax.random.split(key, 16)

    def tconv_p(k, cin, cout):
        kw, kb = jax.random.split(k)
        return dict(w=0.1 * jax.random.normal(kw, (cin, cout, 2, 2), jnp.float32),
                    b=0.1 * jax.random.normal(kb, (cout,), jnp.float32))

    def block_p(k, cin, cout):
        kk = jax.random.split(k, 6)
        return dict(
            w=0.1 * jax.random.normal(kk[0], (cout, cin, 3, 3), jnp.float32),
            b=0.1 * jax.random.normal(kk[1], (cout,), jnp.float32),
            gamma=1.0 + 0.1 * jax.random.normal(kk[2], (cout,), jnp.float32),
            beta=0.1 * jax.random.normal(kk[3], (cout,), jnp.float32),
            mean=0.1 * jax.random.normal(kk[4], (cout,), jnp.float32),
            var=jnp.abs(jax.random.normal(kk[5], (cout,), jnp.float32)) + 0.5)

    params = {
        'convtrans_d3':   tconv_p(ks[0], in_chans * 2, out_chans * 2),
        'convtrans_d2_1': tconv_p(ks[1], in_chans, out_chans),
        'convtrans_d2_2': tconv_p(ks[2], in_chans, out_chans),
        'convtrans_d1_1': tconv_p(ks[3], out_chans, out_chans // 2),
        'convtrans_d1_2': tconv_p(ks[4], out_chans, out_chans // 2),
        'convtrans_d1_3': tconv_p(ks[5], out_chans, out_chans // 2),
        'up_d3':   block_p(ks[6], in_chans * 2, in_chans),
        'up_d2_1': block_p(ks[7], in_chans, out_chans),
        'up_d2_2': block_p(ks[8], in_chans, out_chans),
        'up_d1_1': block_p(ks[9], out_chans, out_chans // 2),
        'up_d1_2': block_p(ks[10], out_chans, out_chans // 2),
        'up_d1_3': block_p(ks[11], out_chans, out_chans // 2),
    }

    d1 = jax.random.normal(ks[12], (B, out_chans // 2, H1, H1), jnp.float32)
    d2 = jax.random.normal(ks[13], (B, out_chans, H1 // 2, H1 // 2), jnp.float32)
    d3 = jax.random.normal(ks[14], (B, in_chans, H1 // 4, H1 // 4), jnp.float32)
    d4 = jax.random.normal(ks[15], (B, in_chans * 2, H1 // 8, H1 // 8), jnp.float32)

    outs = jax.block_until_ready(rc_skip_forward(d1, d2, d3, d4, params))
    refs = jax.block_until_ready(reference_forward(d1, d2, d3, d4, params))

    expected = [
        (B, in_chans, H1 // 4, H1 // 4),        # d3_1
        (B, out_chans, H1 // 2, H1 // 2),       # d2_1
        (B, out_chans, H1 // 2, H1 // 2),       # d2_2
        (B, out_chans // 2, H1, H1),            # d1_1
        (B, out_chans // 2, H1, H1),            # d1_2
        (B, out_chans // 2, H1, H1),            # d1_3
    ]
    for o, r, s in zip(outs, refs, expected):
        assert o.shape == s, (o.shape, s)
        # bf16 activations/weights with f32 accumulation -> looser tolerance
        np.testing.assert_allclose(np.asarray(o), np.asarray(r),
                                   rtol=5e-2, atol=5e-2)
    print("KERNEL_OK")
</pallas_src>

<mosaic_0001>
module attributes {stable_mosaic.version = 11 : i64} {
  func.func @_mm_bias_kernel(%arg0: i32, %arg1: i32, %arg2: memref<1x8x32xbf16, #tpu.memory_space<vmem>>, %arg3: memref<1x32x128xbf16, #tpu.memory_space<vmem>>, %arg4: memref<1x1x128xf32, #tpu.memory_space<vmem>>, %arg5: memref<1x8x128xbf16, #tpu.memory_space<vmem>>) attributes {dimension_semantics = [#tpu.dimension_semantics<parallel>, #tpu.dimension_semantics<parallel>], iteration_bounds = array<i64: 1, 1>, scalar_prefetch = 0 : i64, scratch_operands = 0 : i64, tpu.core_type = #tpu.core_type<tc>, window_params = [{transform_indices = @transform_0, window_bounds = array<i64: 1, 8, 32>}, {transform_indices = @transform_1, window_bounds = array<i64: 1, 32, 128>}, {transform_indices = @transform_2, window_bounds = array<i64: 1, 1, 128>}, {transform_indices = @transform_3, window_bounds = array<i64: 1, 8, 128>}]} {
    %c0 = arith.constant 0 : index
    %c0_0 = arith.constant 0 : index
    %c0_1 = arith.constant 0 : index
    %0 = vector.load %arg2[%c0, %c0_0, %c0_1] : memref<1x8x32xbf16, #tpu.memory_space<vmem>>, vector<1x8x32xbf16>
    %1 = vector.shape_cast %0 : vector<1x8x32xbf16> to vector<8x32xbf16>
    %c0_2 = arith.constant 0 : index
    %c0_3 = arith.constant 0 : index
    %c0_4 = arith.constant 0 : index
    %2 = vector.load %arg3[%c0_2, %c0_3, %c0_4] : memref<1x32x128xbf16, #tpu.memory_space<vmem>>, vector<1x32x128xbf16>
    %3 = vector.shape_cast %2 : vector<1x32x128xbf16> to vector<32x128xbf16>
    %cst = arith.constant dense<0.000000e+00> : vector<8x128xf32>
    %4 = tpu.matmul %1, %3, %cst {dimension_numbers = #tpu.dot_dimension_numbers<[1], [0], [0], [1], [0, 0, 1, 1], [], []>} : vector<8x32xbf16>, vector<32x128xbf16>, vector<8x128xf32> -> vector<8x128xf32>
    %c0_5 = arith.constant 0 : index
    %c0_6 = arith.constant 0 : index
    %c0_7 = arith.constant 0 : index
    %5 = vector.load %arg4[%c0_5, %c0_6, %c0_7] : memref<1x1x128xf32, #tpu.memory_space<vmem>>, vector<1x1x128xf32>
    %6 = vector.shape_cast %5 : vector<1x1x128xf32> to vector<1x128xf32>
    %7 = vector.broadcast %6 : vector<1x128xf32> to vector<8x128xf32>
    %8 = arith.addf %4, %7 : vector<8x128xf32>
    %9 = arith.truncf %8 : vector<8x128xf32> to vector<8x128xbf16>
    %c0_8 = arith.constant 0 : index
    %c0_9 = arith.constant 0 : index
    %c0_10 = arith.constant 0 : index
    %10 = vector.load %arg5[%c0_8, %c0_9, %c0_10] : memref<1x8x128xbf16, #tpu.memory_space<vmem>>, vector<1x8x128xbf16>
    %11 = vector.shape_cast %10 : vector<1x8x128xbf16> to vector<8x128xbf16>
    %12 = vector.shape_cast %9 : vector<8x128xbf16> to vector<1x8x128xbf16>
    tpu.vector_store %arg5[%c0_8, %c0_9, %c0_10], %12 {strides = array<i32>} : memref<1x8x128xbf16, #tpu.memory_space<vmem>>, vector<1x8x128xbf16>,
    return
  }
  func.func @transform_0(%arg0: i32, %arg1: i32) -> (i32, i32, i32) {
    %c0_i32 = arith.constant 0 : i32
    %c0_i32_0 = arith.constant 0 : i32
    return %arg0, %arg1, %c0_i32 : i32, i32, i32
  }
  func.func @transform_1(%arg0: i32, %arg1: i32) -> (i32, i32, i32) {
    %c0_i32 = arith.constant 0 : i32
    %c0_i32_0 = arith.constant 0 : i32
    %c0_i32_1 = arith.constant 0 : i32
    return %arg0, %c0_i32, %c0_i32_0 : i32, i32, i32
  }
  func.func @transform_2(%arg0: i32, %arg1: i32) -> (i32, i32, i32) {
    %c0_i32 = arith.constant 0 : i32
    %c0_i32_0 = arith.constant 0 : i32
    %c0_i32_1 = arith.constant 0 : i32
    return %arg0, %c0_i32, %c0_i32_0 : i32, i32, i32
  }
  func.func @transform_3(%arg0: i32, %arg1: i32) -> (i32, i32, i32) {
    %c0_i32 = arith.constant 0 : i32
    %c0_i32_0 = arith.constant 0 : i32
    return %arg0, %arg1, %c0_i32 : i32, i32, i32
  }
}

</mosaic_0001>

<bundles_post_ra>
// kernel: tpu_custom_call.1
= control target key start
LH: loop header
LB: loop body
LE: loop exit
PB: predicated region body
PF: predicated region fallthrough
CT: control target
= control target key end

     0   :  { %8 = vsyncpa [#allocation3], 0  ;;  %s297_s0 = inlined_call_operand.hbm [shape: bf16[1,8,32], index: 0, kind: input, shape index: {}]   ;;  %s298_s1 = inlined_call_operand.hbm [shape: bf16[1,32,128], index: 1, kind: input, shape index: {}]   ;;  %s299_s2 = inlined_call_operand.vmem [shape: f32[1,1,128], index: 2, kind: input, shape index: {}]   ;;  %s300_s3 = inlined_call_operand.hbm [shape: bf16[1,8,128], index: 3, kind: output, shape index: {}]  }
   0x1   :  { %9 = vsyncpa [#allocation6], 0 }
   0x2   :  { %10 = vsyncpa [#allocation4], 0  ;;  %s224_s12 = smov [#allocation2]   ;;  %s225_s14 = smov [#allocation5]  }
   0x3   :  { %s17_s13 = sshll.u32 %s224_s12, 4  ;;  %s26_s15 = sshll.u32 %s225_s14, 4  ;;  %s18_s13 = int_to_ptr.vmem [resolvable:$true] %s17_s13  ;;  %s251_s15 = int_to_ptr.vmem [resolvable:$true] %s26_s15 }
   0x4   :  { %s152_s18 = scalar_lea.hbm %s297_s0, 64 }
   0x5   :  { %p153_p0 = scmp.ne.s32.totalorder %s297_s0, %s152_s18  ;;  %p156_p1 = scmp.lt.u32.totalorder %s152_s18, %s297_s0 }
   0x7   :  { %p158_p2 = pnand %p156_p1, %p153_p0 }
   0x9   :  { %161 = shalt.err (!%p158_p2)
}
   0xa   :  { %s162_s23 = scalar_lea.vmem %s18_s13, 64  ;;  %p167_p4 = scmp.lt.s32.totalorder %s18_s13, %s18_s13 }
   0xb   :  { %p163_p3 = scmp.ne.s32.totalorder %s18_s13, %s162_s23  ;;  %p168_p5 = scmp.lt.s32.totalorder %s162_s23, %s162_s23 }
   0xd   :  { %p169_p6 = por %p168_p5, %p167_p4 }
   0xf   :  { %p170_p7 = pnand %p169_p6, %p163_p3 }
  0x11   :  { %173 = shalt.err (!%p170_p7)
}
  0x12   :  { %20 = dma.hbm_to_vmem [thread:$0]  %s297_s0, 64, %s18_s13, [#allocation3]  }
  0x13   :  { %s174_s28 = scalar_lea.hbm %s298_s1, 256 }
  0x14   :  { %p175_p8 = scmp.ne.s32.totalorder %s298_s1, %s174_s28  ;;  %p178_p9 = scmp.lt.u32.totalorder %s174_s28, %s298_s1 }
  0x16   :  { %p180_p10 = pnand %p178_p9, %p175_p8 }
  0x18   :  { %183 = shalt.err (!%p180_p10)
}
  0x19   :  { %s184_s6 = scalar_lea.vmem %s251_s15, 256  ;;  %p189_p12 = scmp.lt.s32.totalorder %s251_s15, %s251_s15 }
  0x1a   :  { %p185_p11 = scmp.ne.s32.totalorder %s251_s15, %s184_s6  ;;  %p190_p13 = scmp.lt.s32.totalorder %s184_s6, %s184_s6 }
  0x1c   :  { %p191_p0 = por %p190_p13, %p189_p12 }
  0x1e   :  { %p192_p1 = pnand %p191_p0, %p185_p11 }
  0x20   :  { %195 = shalt.err (!%p192_p1)
}
  0x21   :  { %s226_s0 = smov 64   ;;  %s227_s7 = smov 4  }
  0x22   :  { %32 = dma.hbm_to_vmem [thread:$0]  %s298_s1, 256, %s251_s15, [#allocation6], %s226_s0, %s226_s0, %s227_s7  }
  0x23   :  { %218 = dma.done.wait [#allocation3], 64  }
  0x24   :  { %219 = vsyncadd [#allocation3], 4294967232 }
  0x25   :  { %220 = dma.done.wait [#allocation6], 256  }
  0x26   :  { %221 = vsyncadd [#allocation6], 4294967040  ;;  %v228_v0 = vmov 0.0   ;;  %vm229_vm0 = vmmov 0   ;;  %v150_v1 = vld [vmem:[#allocation5] sm:$0xff]   ;;  %v151_v2 = vld [vmem:[#allocation5 + $0x8] sm:$0xff]  }
  0x27   :  { %135 = vmatprep.subr.bf16.mxu0 %v228_v0  ;;  %139 = vmatprep.mubr.msk.bf16.mxu0 %vm229_vm0, %v228_v0  ;;  %v42_v3 = vld [vmem:[#allocation2] sm:$0xf]  ;;  %vm66_vm1 = vcmask 261120   ;;  %s230_s1 = smov [#allocation7]  }
  0x28   :  { %136 = vmatpush3.bf16.msra.mxu0 %v150_v1  ;;  %v128_v4 = vld [vmem:[%s299_s2] ss:$0 sm:$0xff]  ;;  %s118_s12 = sshll.u32 %s230_s1, 4  ;;  %s119_s12 = int_to_ptr.vmem [resolvable:$true] %s118_s12 }
  0x29   :  { %137 = vmatprep.subr.bf16.mxu0 %v228_v0  ;;  %s196_s13 = scalar_lea.vmem %s119_s12, 64  ;;  %p201_p3 = scmp.lt.s32.totalorder %s119_s12, %s119_s12 }
  0x2a   :  { %p197_p2 = scmp.ne.s32.totalorder %s119_s12, %s196_s13  ;;  %p202_p4 = scmp.lt.s32.totalorder %s196_s13, %s196_s13 }
  0x2c   :  { %138 = vmatpush3.bf16.msra.mxu0 %v151_v2  ;;  %p203_p5 = por %p202_p4, %p201_p3 }
  0x2e   :  { %p204_p6 = pnand %p203_p5, %p197_p2 }
  0x2f   :  { %140 = vmatmul.mubr.msk.bf16.vlgmr.msra.gmra.mrb[0].mxu0 %vm66_vm1, %v42_v3 }
 0x102   :  { %v104_v5 = vpop.f32.mrb[0].mxu0 }
 0x103   :  { %v105_v6 = vadd.f32 %v128_v4, %v104_v5  ;;  %v141_v7 = vpop.f32.mrb[1].mxu0 }
 0x104   :  { %v107_v8 = vpop.f32.mrb[2].mxu0 }
 0x105   :  { %v110_v9 = vpack.c.bf16 %v105_v6, %v105_v6  ;;  %v142_v10 = vpop.f32.mrb[3].mxu0 }
 0x107   :  { %111 = vst [vmem:[#allocation7] sm:$0xf] %v110_v9 }
 0x108   :  { %207 = shalt.err (!%p204_p6)
}
 0x109   :  { %s208_s2 = scalar_lea.hbm %s300_s3, 64 }
 0x10a   :  { %p209_p7 = scmp.ne.s32.totalorder %s300_s3, %s208_s2  ;;  %p212_p8 = scmp.lt.u32.totalorder %s208_s2, %s300_s3 }
 0x10c   :  { %p214_p9 = pnand %p212_p8, %p209_p7 }
 0x10e   :  { %217 = shalt.err (!%p214_p9)
}
 0x10f   :  { %121 = dma.vmem_to_hbm [thread:$0]  %s119_s12, 64, %s300_s3, [#allocation4]  }
 0x110   :  { %222 = dma.done.wait [#allocation4], 64  }
 0x111   :  { %223 = vsyncadd [#allocation4], 4294967232 }
 0x112   :  { %125 = vsyncpa [#allocation3], 1 }
 0x113   :  { %126 = vsyncpa [#allocation6], 1 }
 0x114   :  { %127 = vsyncpa [#allocation4], 1 }

</bundles_post_ra>
